<compile_context>
chip_gen: v7x
topology: tpu7x:2x2x1
jax: 0.10.0
libtpu: 0.0.40
codegen_flags: <defaults>
</compile_context>

<pallas_src>
import functools

import jax
import jax.numpy as jnp
from jax import lax
from jax.experimental import pallas as pl
from jax.experimental.pallas import tpu as pltpu

_BN_EPS = 1e-5
_BIG = 1e30                        # "never selected" distance sentinel
_VMEM_K1 = 48 * 1024 * 1024        # fits v7x's 64 MiB; could go 64-96 MiB on v5e/v6e
_VMEM_MLP = 32 * 1024 * 1024


def _round_up(x, m):
    return ((x + m - 1) // m) * m


def _pad_to(a, shape):
    a = a.astype(jnp.float32)
    pads = [(0, t - s) for s, t in zip(a.shape, shape)]
    return jnp.pad(a, pads)


# --------------------------------------------------------------------------- #
# Kernel 1: k-NN weights + interpolation + layer-0 pointwise conv + BN0 partials
# --------------------------------------------------------------------------- #
def _interp_fc0_kernel(oaug_ref, saug_ref, sfeat_ref, ofeat_ref,
                       w0o_ref, w0s_ref, b0_ref, h0_ref, stat_ref,
                       *, k, n_valid, tn):
    f32 = jnp.float32
    # [8, tn] -> [tn, 8]; small XLU transpose (coords stay channel-major in HBM).
    oaug = jnp.transpose(oaug_ref[0], (1, 0))                    # [tn, 8] f32
    saug = saug_ref[0]                                           # [8, Mp] f32

    # dist[n, m] = ||o_n||^2 + ||s_m||^2 - 2 o_n . s_m  (single K=8 MXU dot).
    # Padded sampled columns carry a 1e30 sentinel so they are never selected.
    dist = jnp.dot(oaug, saug, precision=lax.Precision.HIGHEST,
                   preferred_element_type=f32)                   # [tn, Mp]
    dist = jnp.maximum(dist, 0.0)                                # guard cancellation

    # k-NN: accumulate inverse-distance weights.  Per step: one lane-reduction,
    # one compare, one select+add, one select (no [tn,Mp] divide).
    w_acc = jnp.zeros_like(dist)
    d = dist
    for _ in range(k):                                           # k small & static
        dmin = jnp.min(d, axis=-1, keepdims=True)                # [tn, 1]
        mask = d <= dmin                                         # [tn, Mp] bool
        inv = 1.0 / (dmin + 1e-8)                                # [tn, 1] only
        w_acc = w_acc + jnp.where(mask, inv, 0.0)
        d = jnp.where(mask, _BIG, d)

    # Single weighted gather on the MXU; normalize afterwards with the [tn,1]
    # reciprocal row sum (moves the divide off the [tn,Mp] tile).
    inv_wsum = 1.0 / jnp.sum(w_acc, axis=-1, keepdims=True)      # [tn, 1]
    interp = jnp.dot(w_acc, sfeat_ref[0],
                     preferred_element_type=f32) * inv_wsum      # [tn, Cs] f32

    # Layer-0 pointwise conv on concat([ofeat, interp]) as split bf16 matmuls.
    h0 = (jnp.dot(ofeat_ref[0], w0o_ref[...], preferred_element_type=f32)
          + jnp.dot(interp.astype(jnp.bfloat16), w0s_ref[...],
                    preferred_element_type=f32)
          + b0_ref[...])                                         # [tn, C1p] f32

    h0_ref[0] = h0.astype(h0_ref.dtype)                          # bf16, lane-dense

    # BN0 partial statistics in f32, masking out point-axis padding rows.
    row = pl.program_id(1) * tn + lax.broadcasted_iota(jnp.int32, (tn, 1), 0)
    valid = (row < n_valid).astype(f32)                          # [tn, 1]
    hm = h0 * valid
    s1 = jnp.sum(hm, axis=0, keepdims=True)                      # [1, C1p]
    s2 = jnp.sum(hm * h0, axis=0, keepdims=True)                 # [1, C1p]
    stat_ref[0, 0] = jnp.concatenate([s1, s2], axis=0)           # [2, C1p]


# --------------------------------------------------------------------------- #
# Kernel 2: BN_{i-1} + ReLU + layer-i pointwise conv + BN_i partials (tiled)
# --------------------------------------------------------------------------- #
def _bn_fc_kernel(h_ref, sc_ref, sh_ref, w_ref, b_ref, out_ref, stat_ref,
                  *, n_valid, tn):
    f32 = jnp.float32
    x = jnp.maximum(h_ref[0].astype(f32) * sc_ref[...] + sh_ref[...], 0.0)
    h = (jnp.dot(x.astype(jnp.bfloat16), w_ref[...],
                 preferred_element_type=f32) + b_ref[...])       # [tn, Cp] f32
    out_ref[0] = h.astype(out_ref.dtype)                         # bf16

    row = pl.program_id(1) * tn + lax.broadcasted_iota(jnp.int32, (tn, 1), 0)
    valid = (row < n_valid).astype(f32)
    hm = h * valid
    stat_ref[0, 0] = jnp.concatenate(
        [jnp.sum(hm, axis=0, keepdims=True),
         jnp.sum(hm * h, axis=0, keepdims=True)], axis=0)


# --------------------------------------------------------------------------- #
# Kernel 3: final BN + ReLU application (tiled)
# --------------------------------------------------------------------------- #
def _bn_relu_kernel(h_ref, sc_ref, sh_ref, out_ref):
    out_ref[0] = jnp.maximum(
        h_ref[0].astype(jnp.float32) * sc_ref[...] + sh_ref[...], 0.0)


def _bn_scale_shift(stats, gamma_p, beta_p, count):
    """Finalize training-mode BN from per-tile partial sums (biased variance)."""
    s1 = jnp.sum(stats[:, :, 0, :], axis=(0, 1))
    s2 = jnp.sum(stats[:, :, 1, :], axis=(0, 1))
    mean = s1 / count
    var = jnp.maximum(s2 / count - mean * mean, 0.0)
    rstd = 1.0 / jnp.sqrt(var + _BN_EPS)
    scale = gamma_p[0] * rstd
    shift = beta_p[0] - scale * mean
    return scale[None, :], shift[None, :]


def feature_propagation(sampled_xyz, sampled_features, original_xyz,
                        original_features, params, k):
    """params = [(W [Cin,Cout], b [1,Cout], gamma [1,Cout], beta [1,Cout]), ...]."""
    B, M, _ = sampled_xyz.shape
    _, N, _ = original_xyz.shape
    Cs = sampled_features.shape[-1]
    Co = original_features.shape[-1]
    n_layers = len(params)

    f32, bf16 = jnp.float32, jnp.bfloat16

    # Point-axis tiling: tn up to 256 (MXU-width friendly, v7x VMEM-budget safe);
    # N is padded up to a tile multiple and padded rows are masked out of BN stats.
    tn = 256 if N >= 256 else max(8, _round_up(N, 8))
    Np = _round_up(N, tn)
    n_tiles = Np // tn
    Mp = _round_up(M, 128)   # sampled axis padded; sentinel keeps pads unselected

    # ---- augmented coordinates (channel-major) --------------------------------
    oxyz = original_xyz.astype(f32)
    sxyz = sampled_xyz.astype(f32)
    o_sq = jnp.sum(oxyz * oxyz, axis=-1, keepdims=True)
    s_sq = jnp.sum(sxyz * sxyz, axis=-1, keepdims=True)
    oaug = jnp.concatenate([oxyz, o_sq, jnp.ones((B, N, 1), f32),
                            jnp.zeros((B, N, 3), f32)], axis=-1)        # [B,N,8]
    saug = jnp.concatenate([-2.0 * sxyz, jnp.ones((B, M, 1), f32), s_sq,
                            jnp.zeros((B, M, 3), f32)], axis=-1)        # [B,M,8]
    oaug = jnp.pad(oaug, ((0, 0), (0, Np - N), (0, 0)))
    if Mp > M:
        pad_cols = jnp.zeros((B, Mp - M, 8), f32).at[:, :, 4].set(_BIG)
        saug = jnp.concatenate([saug, pad_cols], axis=1)
    oaug_t = jnp.transpose(oaug, (0, 2, 1))                             # [B,8,Np]
    saug_t = jnp.transpose(saug, (0, 2, 1))                             # [B,8,Mp]

    # Features staged in bf16 (MXU runs bf16 passes anyway; halves HBM traffic).
    sfeat = jnp.pad(sampled_features.astype(bf16), ((0, 0), (0, Mp - M), (0, 0)))
    ofeat = jnp.pad(original_features.astype(bf16), ((0, 0), (0, Np - N), (0, 0)))

    # ---- lane-dense-padded MLP parameters -------------------------------------
    cps, w_list, b_list, g_list, be_list = [], [], [], [], []
    for li, (W, b, g, be) in enumerate(params):
        c_out = W.shape[-1]
        cp = _round_up(c_out, 128)
        in_p = (Co + Cs) if li == 0 else cps[li - 1]
        cps.append(cp)
        w_list.append(_pad_to(W, (in_p, cp)))
        b_list.append(_pad_to(b, (1, cp)))
        g_list.append(_pad_to(g, (1, cp)))
        be_list.append(_pad_to(be, (1, cp)))
    C1p = cps[0]
    w0o = w_list[0][:Co].astype(bf16)
    w0s = w_list[0][Co:].astype(bf16)

    # ---- pass 1: interpolation + layer-0 conv + BN0 partials -------------------
    h, stats = pl.pallas_call(
        functools.partial(_interp_fc0_kernel, k=k, n_valid=N, tn=tn),
        out_shape=(jax.ShapeDtypeStruct((B, Np, C1p), bf16),
                   jax.ShapeDtypeStruct((B, n_tiles, 2, C1p), f32)),
        grid=(B, n_tiles),
        in_specs=[
            pl.BlockSpec((1, 8, tn), lambda b, n: (b, 0, n)),    # oaug (chan-major)
            pl.BlockSpec((1, 8, Mp), lambda b, n: (b, 0, 0)),    # saug (chan-major)
            pl.BlockSpec((1, Mp, Cs), lambda b, n: (b, 0, 0)),   # sampled features
            pl.BlockSpec((1, tn, Co), lambda b, n: (b, n, 0)),   # original features
            pl.BlockSpec((Co, C1p), lambda b, n: (0, 0)),        # W0 (orig part)
            pl.BlockSpec((Cs, C1p), lambda b, n: (0, 0)),        # W0 (interp part)
            pl.BlockSpec((1, C1p), lambda b, n: (0, 0)),         # b0
        ],
        out_specs=(pl.BlockSpec((1, tn, C1p), lambda b, n: (b, n, 0)),
                   pl.BlockSpec((1, 1, 2, C1p), lambda b, n: (b, n, 0, 0))),
        compiler_params=pltpu.CompilerParams(
            dimension_semantics=("parallel", "parallel"),
            vmem_limit_bytes=_VMEM_K1),
    )(oaug_t, saug_t, sfeat, ofeat, w0o, w0s, b_list[0])

    cnt = jnp.float32(B * N)

    # ---- passes 2..L: BN_{i-1}+ReLU + conv_i + BN_i partials (row-tiled) -------
    for li in range(1, n_layers):
        scale, shift = _bn_scale_shift(stats, g_list[li - 1], be_list[li - 1], cnt)
        cin_p, cout_p = cps[li - 1], cps[li]
        h, stats = pl.pallas_call(
            functools.partial(_bn_fc_kernel, n_valid=N, tn=tn),
            out_shape=(jax.ShapeDtypeStruct((B, Np, cout_p), bf16),
                       jax.ShapeDtypeStruct((B, n_tiles, 2, cout_p), f32)),
            grid=(B, n_tiles),
            in_specs=[
                pl.BlockSpec((1, tn, cin_p), lambda b, n: (b, n, 0)),
                pl.BlockSpec((1, cin_p), lambda b, n: (0, 0)),
                pl.BlockSpec((1, cin_p), lambda b, n: (0, 0)),
                pl.BlockSpec((cin_p, cout_p), lambda b, n: (0, 0)),
                pl.BlockSpec((1, cout_p), lambda b, n: (0, 0)),
            ],
            out_specs=(pl.BlockSpec((1, tn, cout_p), lambda b, n: (b, n, 0)),
                       pl.BlockSpec((1, 1, 2, cout_p), lambda b, n: (b, n, 0, 0))),
            compiler_params=pltpu.CompilerParams(
                dimension_semantics=("parallel", "parallel"),
                vmem_limit_bytes=_VMEM_MLP),
        )(h, scale, shift, w_list[li].astype(bf16), b_list[li])

    # ---- final pass: last BN + ReLU (row-tiled) --------------------------------
    scale, shift = _bn_scale_shift(stats, g_list[-1], be_list[-1], cnt)
    cout_p = cps[-1]
    out = pl.pallas_call(
        _bn_relu_kernel,
        out_shape=jax.ShapeDtypeStruct((B, Np, cout_p), f32),
        grid=(B, n_tiles),
        in_specs=[
            pl.BlockSpec((1, tn, cout_p), lambda b, n: (b, n, 0)),
            pl.BlockSpec((1, cout_p), lambda b, n: (0, 0)),
            pl.BlockSpec((1, cout_p), lambda b, n: (0, 0)),
        ],
        out_specs=pl.BlockSpec((1, tn, cout_p), lambda b, n: (b, n, 0)),
        compiler_params=pltpu.CompilerParams(
            dimension_semantics=("parallel", "parallel"),
            vmem_limit_bytes=_VMEM_MLP),
    )(h, scale, shift)

    return out[:, :N, :params[-1][0].shape[-1]]


def reference(sampled_xyz, sampled_features, original_xyz, original_features, params, k):
    """Pure-JAX mirror of the PyTorch forward (training-mode BN, f32 'highest')."""
    d = jnp.sum((original_xyz[:, :, None, :] - sampled_xyz[:, None, :, :]) ** 2, axis=-1)
    neg_vals, idx = jax.lax.top_k(-d, k)                     # k smallest squared dists
    knn_d = -neg_vals
    w = 1.0 / (knn_d + 1e-8)
    w = w / jnp.sum(w, axis=-1, keepdims=True)
    knn_feat = jax.vmap(lambda feat, i: feat[i])(sampled_features, idx)   # [B,N,k,Cs]
    interp = jnp.sum(knn_feat * w[..., None], axis=2)                     # [B,N,Cs]
    x = jnp.concatenate([original_features, interp], axis=-1)
    for (W, b, g, be) in params:
        h = jnp.einsum('bnc,cd->bnd', x, W, precision='highest') + b[None]
        mean = jnp.mean(h, axis=(0, 1), keepdims=True)
        var = jnp.mean((h - mean) ** 2, axis=(0, 1), keepdims=True)
        x = jnp.maximum((h - mean) / jnp.sqrt(var + _BN_EPS) * g[None] + be[None], 0.0)
    return x


if __name__ == "__main__":
    B, N, M, Cs, Co, k = 2, 16, 8, 8, 8, 3
    mlp_out_channels = [32, 16]

    key = jax.random.PRNGKey(0)
    ks = jax.random.split(key, 4 + 4 * len(mlp_out_channels))
    sampled_xyz = jax.random.normal(ks[0], (B, M, 3), jnp.float32)
    original_xyz = jax.random.normal(ks[1], (B, N, 3), jnp.float32)
    sampled_features = jax.random.normal(ks[2], (B, M, Cs), jnp.float32)
    original_features = jax.random.normal(ks[3], (B, N, Co), jnp.float32)

    # deterministic synthetic parameters (Conv1d weight [out,in,1] stored as [in,out])
    params = []
    c_in = Co + Cs
    i = 4
    for c_out in mlp_out_channels:
        W = 0.1 * jax.random.normal(ks[i], (c_in, c_out), jnp.float32)
        b = 0.1 * jax.random.normal(ks[i + 1], (1, c_out), jnp.float32)
        g = 1.0 + 0.1 * jax.random.normal(ks[i + 2], (1, c_out), jnp.float32)
        be = 0.1 * jax.random.normal(ks[i + 3], (1, c_out), jnp.float32)
        params.append((W, b, g, be))
        c_in = c_out
        i += 4

    out = feature_propagation(sampled_xyz, sampled_features, original_xyz,
                              original_features, params, k)
    jax.block_until_ready(out)

    ref = reference(sampled_xyz, sampled_features, original_xyz,
                    original_features, params, k)
    assert out.shape == (B, N, mlp_out_channels[-1])
    # Tolerance covers bf16-staged features/activations + bf16 MXU passes in the
    # kernel vs the HIGHEST-precision f32 reference (BN normalization amplifies
    # the ~0.4% bf16 rounding); genuine bugs produce O(0.3-3) diffs post-BN.
    assert jnp.allclose(out, ref, rtol=5e-2, atol=5e-2), float(jnp.max(jnp.abs(out - ref)))
    print("KERNEL_OK")
</pallas_src>

<mosaic_0001>
module attributes {stable_mosaic.version = 11 : i64} {
  func.func @_interp_fc0_kernel(%arg0: i32, %arg1: i32, %arg2: memref<1x8x16xf32, #tpu.memory_space<vmem>>, %arg3: memref<1x8x128xf32, #tpu.memory_space<vmem>>, %arg4: memref<1x128x8xbf16, #tpu.memory_space<vmem>>, %arg5: memref<1x16x8xbf16, #tpu.memory_space<vmem>>, %arg6: memref<8x128xbf16, #tpu.memory_space<vmem>>, %arg7: memref<8x128xbf16, #tpu.memory_space<vmem>>, %arg8: memref<1x128xf32, #tpu.memory_space<vmem>>, %arg9: memref<1x16x128xbf16, #tpu.memory_space<vmem>>, %arg10: memref<1x1x2x128xf32, #tpu.memory_space<vmem>>) attributes {dimension_semantics = [#tpu.dimension_semantics<parallel>, #tpu.dimension_semantics<parallel>], iteration_bounds = array<i64: 2, 1>, scalar_prefetch = 0 : i64, scratch_operands = 0 : i64, tpu.core_type = #tpu.core_type<tc>, window_params = [{transform_indices = @transform_0, window_bounds = array<i64: 1, 8, 16>}, {transform_indices = @transform_1, window_bounds = array<i64: 1, 8, 128>}, {transform_indices = @transform_2, window_bounds = array<i64: 1, 128, 8>}, {transform_indices = @transform_3, window_bounds = array<i64: 1, 16, 8>}, {pipeline_mode = #tpu.pipeline_mode<synchronous>, transform_indices = @transform_4, window_bounds = array<i64: 8, 128>}, {pipeline_mode = #tpu.pipeline_mode<synchronous>, transform_indices = @transform_5, window_bounds = array<i64: 8, 128>}, {pipeline_mode = #tpu.pipeline_mode<synchronous>, transform_indices = @transform_6, window_bounds = array<i64: 1, 128>}, {transform_indices = @transform_7, window_bounds = array<i64: 1, 16, 128>}, {transform_indices = @transform_8, window_bounds = array<i64: 1, 1, 2, 128>}]} {
    %c0 = arith.constant 0 : index
    %c0_0 = arith.constant 0 : index
    %c0_1 = arith.constant 0 : index
    %0 = vector.load %arg2[%c0, %c0_0, %c0_1] : memref<1x8x16xf32, #tpu.memory_space<vmem>>, vector<1x8x16xf32>
    %1 = vector.shape_cast %0 : vector<1x8x16xf32> to vector<8x16xf32>
    %2 = tpu.transpose %1, [1, 0] : vector<8x16xf32> -> vector<16x8xf32>
    %c0_2 = arith.constant 0 : index
    %c0_3 = arith.constant 0 : index
    %c0_4 = arith.constant 0 : index
    %3 = vector.load %arg3[%c0_2, %c0_3, %c0_4] : memref<1x8x128xf32, #tpu.memory_space<vmem>>, vector<1x8x128xf32>
    %4 = vector.shape_cast %3 : vector<1x8x128xf32> to vector<8x128xf32>
    %cst = arith.constant dense<0.000000e+00> : vector<16x128xf32>
    %5 = tpu.matmul %2, %4, %cst {dimension_numbers = #tpu.dot_dimension_numbers<[1], [0], [0], [1], [0, 0, 1, 1], [], []>, precision = #tpu.contract_precision<fp32>} : vector<16x8xf32>, vector<8x128xf32>, vector<16x128xf32> -> vector<16x128xf32>
    %cst_5 = arith.constant 0.000000e+00 : f32
    %6 = vector.broadcast %cst_5 : f32 to vector<16x128xf32>
    %7 = arith.maximumf %5, %6 : vector<16x128xf32>
    %cst_6 = arith.constant 0.000000e+00 : f32
    %8 = vector.broadcast %cst_6 : f32 to vector<16x128xf32>
    %cst_7 = arith.constant dense<0x7F800000> : vector<16xf32>
    %9 = vector.multi_reduction <minimumf>, %7, %cst_7 [1] : vector<16x128xf32> to vector<16xf32>
    %10 = vector.shape_cast %9 : vector<16xf32> to vector<16x1xf32>
    %11 = vector.broadcast %10 : vector<16x1xf32> to vector<16x128xf32>
    %12 = arith.cmpf ole, %7, %11 : vector<16x128xf32>
    %cst_8 = arith.constant 9.99999993E-9 : f32
    %13 = vector.broadcast %cst_8 : f32 to vector<16x1xf32>
    %14 = arith.addf %10, %13 : vector<16x1xf32>
    %cst_9 = arith.constant 1.000000e+00 : f32
    %15 = vector.broadcast %cst_9 : f32 to vector<16x1xf32>
    %16 = arith.divf %15, %14 : vector<16x1xf32>
    %cst_10 = arith.constant 0.000000e+00 : f32
    %17 = vector.shape_cast %16 : vector<16x1xf32> to vector<16x1xf32>
    %18 = vector.broadcast %17 : vector<16x1xf32> to vector<16x128xf32>
    %19 = vector.broadcast %cst_10 : f32 to vector<16x128xf32>
    %20 = arith.select %12, %18, %19 : vector<16x128xi1>, vector<16x128xf32>
    %21 = arith.addf %8, %20 : vector<16x128xf32>
    %cst_11 = arith.constant 1.000000e+30 : f32
    %22 = vector.broadcast %cst_11 : f32 to vector<16x128xf32>
    %23 = arith.select %12, %22, %7 : vector<16x128xi1>, vector<16x128xf32>
    %cst_12 = arith.constant dense<0x7F800000> : vector<16xf32>
    %24 = vector.multi_reduction <minimumf>, %23, %cst_12 [1] : vector<16x128xf32> to vector<16xf32>
    %25 = vector.shape_cast %24 : vector<16xf32> to vector<16x1xf32>
    %26 = vector.broadcast %25 : vector<16x1xf32> to vector<16x128xf32>
    %27 = arith.cmpf ole, %23, %26 : vector<16x128xf32>
    %cst_13 = arith.constant 9.99999993E-9 : f32
    %28 = vector.broadcast %cst_13 : f32 to vector<16x1xf32>
    %29 = arith.addf %25, %28 : vector<16x1xf32>
    %cst_14 = arith.constant 1.000000e+00 : f32
    %30 = vector.broadcast %cst_14 : f32 to vector<16x1xf32>
    %31 = arith.divf %30, %29 : vector<16x1xf32>
    %cst_15 = arith.constant 0.000000e+00 : f32
    %32 = vector.shape_cast %31 : vector<16x1xf32> to vector<16x1xf32>
    %33 = vector.broadcast %32 : vector<16x1xf32> to vector<16x128xf32>
    %34 = vector.broadcast %cst_15 : f32 to vector<16x128xf32>
    %35 = arith.select %27, %33, %34 : vector<16x128xi1>, vector<16x128xf32>
    %36 = arith.addf %21, %35 : vector<16x128xf32>
    %cst_16 = arith.constant 1.000000e+30 : f32
    %37 = vector.broadcast %cst_16 : f32 to vector<16x128xf32>
    %38 = arith.select %27, %37, %23 : vector<16x128xi1>, vector<16x128xf32>
    %cst_17 = arith.constant dense<0x7F800000> : vector<16xf32>
    %39 = vector.multi_reduction <minimumf>, %38, %cst_17 [1] : vector<16x128xf32> to vector<16xf32>
    %40 = vector.shape_cast %39 : vector<16xf32> to vector<16x1xf32>
    %41 = vector.broadcast %40 : vector<16x1xf32> to vector<16x128xf32>
    %42 = arith.cmpf ole, %38, %41 : vector<16x128xf32>
    %cst_18 = arith.constant 9.99999993E-9 : f32
    %43 = vector.broadcast %cst_18 : f32 to vector<16x1xf32>
    %44 = arith.addf %40, %43 : vector<16x1xf32>
    %cst_19 = arith.constant 1.000000e+00 : f32
    %45 = vector.broadcast %cst_19 : f32 to vector<16x1xf32>
    %46 = arith.divf %45, %44 : vector<16x1xf32>
    %cst_20 = arith.constant 0.000000e+00 : f32
    %47 = vector.shape_cast %46 : vector<16x1xf32> to vector<16x1xf32>
    %48 = vector.broadcast %47 : vector<16x1xf32> to vector<16x128xf32>
    %49 = vector.broadcast %cst_20 : f32 to vector<16x128xf32>
    %50 = arith.select %42, %48, %49 : vector<16x128xi1>, vector<16x128xf32>
    %51 = arith.addf %36, %50 : vector<16x128xf32>
    %cst_21 = arith.constant dense<0.000000e+00> : vector<16xf32>
    %52 = vector.multi_reduction <add>, %51, %cst_21 [1] : vector<16x128xf32> to vector<16xf32>
    %53 = vector.shape_cast %52 : vector<16xf32> to vector<16x1xf32>
    %cst_22 = arith.constant 1.000000e+00 : f32
    %54 = vector.broadcast %cst_22 : f32 to vector<16x1xf32>
    %55 = arith.divf %54, %53 : vector<16x1xf32>
    %c0_23 = arith.constant 0 : index
    %c0_24 = arith.constant 0 : index
    %c0_25 = arith.constant 0 : index
    %56 = vector.load %arg4[%c0_23, %c0_24, %c0_25] : memref<1x128x8xbf16, #tpu.memory_space<vmem>>, vector<1x128x8xbf16>
    %57 = vector.shape_cast %56 : vector<1x128x8xbf16> to vector<128x8xbf16>
    %cst_26 = arith.constant dense<0.000000e+00> : vector<16x8xf32>
    %58 = tpu.matmul %51, %57, %cst_26 {dimension_numbers = #tpu.dot_dimension_numbers<[1], [0], [0], [1], [0, 0, 1, 1], [], []>} : vector<16x128xf32>, vector<128x8xbf16>, vector<16x8xf32> -> vector<16x8xf32>
    %59 = vector.broadcast %55 : vector<16x1xf32> to vector<16x8xf32>
    %60 = arith.mulf %58, %59 : vector<16x8xf32>
    %c0_27 = arith.constant 0 : index
    %c0_28 = arith.constant 0 : index
    %c0_29 = arith.constant 0 : index
    %61 = vector.load %arg5[%c0_27, %c0_28, %c0_29] : memref<1x16x8xbf16, #tpu.memory_space<vmem>>, vector<1x16x8xbf16>
    %62 = vector.shape_cast %61 : vector<1x16x8xbf16> to vector<16x8xbf16>
    %c0_30 = arith.constant 0 : index
    %c0_31 = arith.constant 0 : index
    %63 = vector.load %arg6[%c0_30, %c0_31] : memref<8x128xbf16, #tpu.memory_space<vmem>>, vector<8x128xbf16>
    %cst_32 = arith.constant dense<0.000000e+00> : vector<16x128xf32>
    %64 = tpu.matmul %62, %63, %cst_32 {dimension_numbers = #tpu.dot_dimension_numbers<[1], [0], [0], [1], [0, 0, 1, 1], [], []>} : vector<16x8xbf16>, vector<8x128xbf16>, vector<16x128xf32> -> vector<16x128xf32>
    %65 = arith.truncf %60 : vector<16x8xf32> to vector<16x8xbf16>
    %c0_33 = arith.constant 0 : index
    %c0_34 = arith.constant 0 : index
    %66 = vector.load %arg7[%c0_33, %c0_34] : memref<8x128xbf16, #tpu.memory_space<vmem>>, vector<8x128xbf16>
    %cst_35 = arith.constant dense<0.000000e+00> : vector<16x128xf32>
    %67 = tpu.matmul %65, %66, %cst_35 {dimension_numbers = #tpu.dot_dimension_numbers<[1], [0], [0], [1], [0, 0, 1, 1], [], []>} : vector<16x8xbf16>, vector<8x128xbf16>, vector<16x128xf32> -> vector<16x128xf32>
    %68 = arith.addf %64, %67 : vector<16x128xf32>
    %c0_36 = arith.constant 0 : index
    %c0_37 = arith.constant 0 : index
    %69 = vector.load %arg8[%c0_36, %c0_37] : memref<1x128xf32, #tpu.memory_space<vmem>>, vector<1x128xf32>
    %70 = vector.broadcast %69 : vector<1x128xf32> to vector<16x128xf32>
    %71 = arith.addf %68, %70 : vector<16x128xf32>
    %72 = arith.truncf %71 : vector<16x128xf32> to vector<16x128xbf16>
    %c0_38 = arith.constant 0 : index
    %c0_39 = arith.constant 0 : index
    %c0_40 = arith.constant 0 : index
    %73 = vector.load %arg9[%c0_38, %c0_39, %c0_40] : memref<1x16x128xbf16, #tpu.memory_space<vmem>>, vector<1x16x128xbf16>
    %74 = vector.shape_cast %73 : vector<1x16x128xbf16> to vector<16x128xbf16>
    %75 = vector.shape_cast %72 : vector<16x128xbf16> to vector<1x16x128xbf16>
    tpu.vector_store %arg9[%c0_38, %c0_39, %c0_40], %75 {strides = array<i32>} : memref<1x16x128xbf16, #tpu.memory_space<vmem>>, vector<1x16x128xbf16>,
    %c16_i32 = arith.constant 16 : i32
    %76 = arith.muli %arg1, %c16_i32 : i32
    %77 = tpu.iota {dimensions = array<i32: 0>} : vector<16x1xi32>
    %78 = vector.broadcast %76 : i32 to vector<16x1xi32>
    %79 = arith.addi %78, %77 : vector<16x1xi32>
    %c16_i32_41 = arith.constant 16 : i32
    %80 = vector.broadcast %c16_i32_41 : i32 to vector<16x1xi32>
    %81 = arith.cmpi slt, %79, %80 : vector<16x1xi32>
    %82 = arith.extui %81 : vector<16x1xi1> to vector<16x1xi32>
    %83 = arith.sitofp %82 : vector<16x1xi32> to vector<16x1xf32>
    %84 = vector.broadcast %83 : vector<16x1xf32> to vector<16x128xf32>
    %85 = arith.mulf %71, %84 : vector<16x128xf32>
    %cst_42 = arith.constant dense<0.000000e+00> : vector<128xf32>
    %86 = vector.multi_reduction <add>, %85, %cst_42 [0] : vector<16x128xf32> to vector<128xf32>
    %87 = vector.shape_cast %86 : vector<128xf32> to vector<1x128xf32>
    %88 = arith.mulf %85, %71 : vector<16x128xf32>
    %cst_43 = arith.constant dense<0.000000e+00> : vector<128xf32>
    %89 = vector.multi_reduction <add>, %88, %cst_43 [0] : vector<16x128xf32> to vector<128xf32>
    %90 = vector.shape_cast %89 : vector<128xf32> to vector<1x128xf32>
    %91 = tpu.concatenate %87, %90 in 0 : vector<1x128xf32>, vector<1x128xf32> -> vector<2x128xf32>
    %c0_44 = arith.constant 0 : index
    %c0_45 = arith.constant 0 : index
    %c0_46 = arith.constant 0 : index
    %c0_47 = arith.constant 0 : index
    %92 = vector.load %arg10[%c0_44, %c0_45, %c0_46, %c0_47] : memref<1x1x2x128xf32, #tpu.memory_space<vmem>>, vector<1x1x2x128xf32>
    %93 = vector.shape_cast %92 : vector<1x1x2x128xf32> to vector<2x128xf32>
    %94 = vector.shape_cast %91 : vector<2x128xf32> to vector<1x1x2x128xf32>
    tpu.vector_store %arg10[%c0_44, %c0_45, %c0_46, %c0_47], %94 {strides = array<i32>} : memref<1x1x2x128xf32, #tpu.memory_space<vmem>>, vector<1x1x2x128xf32>,
    return
  }
  func.func @transform_0(%arg0: i32, %arg1: i32) -> (i32, i32, i32) {
    %c0_i32 = arith.constant 0 : i32
    %c0_i32_0 = arith.constant 0 : i32
    return %arg0, %c0_i32, %arg1 : i32, i32, i32
  }
  func.func @transform_1(%arg0: i32, %arg1: i32) -> (i32, i32, i32) {
    %c0_i32 = arith.constant 0 : i32
    %c0_i32_0 = arith.constant 0 : i32
    %c0_i32_1 = arith.constant 0 : i32
    return %arg0, %c0_i32, %c0_i32_0 : i32, i32, i32
  }
  func.func @transform_2(%arg0: i32, %arg1: i32) -> (i32, i32, i32) {
    %c0_i32 = arith.constant 0 : i32
    %c0_i32_0 = arith.constant 0 : i32
    %c0_i32_1 = arith.constant 0 : i32
    return %arg0, %c0_i32, %c0_i32_0 : i32, i32, i32
  }
  func.func @transform_3(%arg0: i32, %arg1: i32) -> (i32, i32, i32) {
    %c0_i32 = arith.constant 0 : i32
    %c0_i32_0 = arith.constant 0 : i32
    return %arg0, %arg1, %c0_i32 : i32, i32, i32
  }
  func.func @transform_4(%arg0: i32, %arg1: i32) -> (i32, i32) {
    %c0_i32 = arith.constant 0 : i32
    %c0_i32_0 = arith.constant 0 : i32
    %c0_i32_1 = arith.constant 0 : i32
    return %c0_i32, %c0_i32_0 : i32, i32
  }
  func.func @transform_5(%arg0: i32, %arg1: i32) -> (i32, i32) {
    %c0_i32 = arith.constant 0 : i32
    %c0_i32_0 = arith.constant 0 : i32
    %c0_i32_1 = arith.constant 0 : i32
    return %c0_i32, %c0_i32_0 : i32, i32
  }
  func.func @transform_6(%arg0: i32, %arg1: i32) -> (i32, i32) {
    %c0_i32 = arith.constant 0 : i32
    %c0_i32_0 = arith.constant 0 : i32
    %c0_i32_1 = arith.constant 0 : i32
    return %c0_i32, %c0_i32_0 : i32, i32
  }
  func.func @transform_7(%arg0: i32, %arg1: i32) -> (i32, i32, i32) {
    %c0_i32 = arith.constant 0 : i32
    %c0_i32_0 = arith.constant 0 : i32
    return %arg0, %arg1, %c0_i32 : i32, i32, i32
  }
  func.func @transform_8(%arg0: i32, %arg1: i32) -> (i32, i32, i32, i32) {
    %c0_i32 = arith.constant 0 : i32
    %c0_i32_0 = arith.constant 0 : i32
    %c0_i32_1 = arith.constant 0 : i32
    return %arg0, %arg1, %c0_i32, %c0_i32_0 : i32, i32, i32, i32
  }
}

</mosaic_0001>

<bundles_post_ra>
// kernel: tpu_custom_call.1
= control target key start
LH: loop header
LB: loop body
LE: loop exit
PB: predicated region body
PF: predicated region fallthrough
CT: control target
= control target key end

     0   :  { %14 = vsyncpa [#allocation3], 0  ;;  %s2055_s0 = inlined_call_operand.vmem [shape: f32[2,8,16], index: 0, kind: input, shape index: {}]   ;;  %s2056_s1 = inlined_call_operand.vmem [shape: f32[2,8,128], index: 1, kind: input, shape index: {}]   ;;  %s2057_s2 = inlined_call_operand.vmem [shape: bf16[2,128,8], index: 2, kind: input, shape index: {}]   ;;  %s2058_s3 = inlined_call_operand.vmem [shape: bf16[2,16,8], index: 3, kind: input, shape index: {}]   ;;  %s2059_s4 = inlined_call_operand.vmem [shape: bf16[8,128], index: 4, kind: input, shape index: {}]   ;;  %s2060_s5 = inlined_call_operand.vmem [shape: bf16[8,128], index: 5, kind: input, shape index: {}]   ;;  %s2061_s6 = inlined_call_operand.vmem [shape: f32[1,128], index: 6, kind: input, shape index: {}]   ;;  %s2062_s7 = inlined_call_operand.hbm [shape: bf16[2,16,128], index: 7, kind: output, shape index: {0}]   ;;  %s2063_s8 = inlined_call_operand.hbm [shape: f32[2,1,2,128], index: 8, kind: output, shape index: {1}]  }
   0x1   :  { %16 = vsyncpa [#allocation3 + $0x1], 0 }
   0x2   :  { %17 = vsyncpa [#allocation5], 0 }
   0x3   :  { %19 = vsyncpa [#allocation5 + $0x1], 0  ;;  %s1858_s27 = smov 0   ;;  %s1860_s28 = smov 0  }
   0x4   :  { %s1862_s29 = smov 0   ;;  %s1864_s30 = smov 0  }
   0x5   :  { %s1866_s9 = smov 0   ;;  %s1868_s10 = smov 0  }
   0x6 LB: > { %2066 = sst [smem:[#allocation8_spill]] %s1801_s9  ;;  %s1459_s11 = sadd.s32 4294967295, %s1805_s10   ;;  %s1805_s10 = sphi %s1868_s10, %s25_s10   ;;  %s1801_s9 = sphi %s1866_s9, %s2073_s9   ;;  %s1797_s30 = sphi %s1864_s30, %s2072_s30   ;;  %s1793_s29 = sphi %s1862_s29, %s2076_s29   ;;  %s1789_s28 = sphi %s1860_s28, %s2075_s28   ;;  %s1785_s27 = sphi %s1858_s27, %s2074_s27  }
   0x7   : > { %s1460_s12 = sadd.s32 4294967294, %s1805_s10   ;;  %s37_s13 = sadd.s32 1, %s1801_s9 }
   0x8   : > { %s217_s14 = sadd.s32 1, %s1793_s29  ;;  %p39_p0 = scmp.ge.s32.totalorder %s37_s13, 2 }
   0x9   : > { %p227_p1 = scmp.ne.s32.totalorder %s1793_s29, %s1789_s28  ;;  %p228_p2 = scmp.eq.s32.totalorder %s1459_s11, 1 }
   0xa   : > { %p233_p3 = scmp.ne.s32.totalorder %s1789_s28, %s1785_s27  ;;  %s2078_s13 = smov (%p39_p0, %s37_s13), 0 }
   0xb   : > { %2067 = sst [smem:[#allocation9_spill]] %s2078_s13  ;;  %p1898_p4 = por %p228_p2, %p227_p1 }
   0xc   : > { %p234_p5 = scmp.eq.s32.totalorder %s1460_s12, 1  ;;  %s212_s16 = ssub.s32 %s1801_s9, %s2078_s13 }
   0xd   : > { %p1463_p6 = scmp.ge.s32.totalorder %s1805_s10, 1  ;;  %p215_p7 = scmp.eq.s32.totalorder %s212_s16, 0 }
   0xe   : > { %p1905_p8 = por %p234_p5, %p233_p3  ;;  %p327_p9 = scmp.lt.s32.totalorder %s1805_s10, 3 }
   0xf   : > { %s1911_s18 = scalar_select %p215_p7, %s1793_s29, %s217_s14  }
  0x10   : > { %p328_p10 = pnand %p1463_p6, %p327_p9 }
  0x11   : > { %2070 = sst [smem:[#allocation10_spill]] %s1911_s18  ;;  %p386_p11 = scmp.lt.s32.totalorder (!%p328_p10), %s1797_s30, 1  ;;  %vm448_vm0 = vcmask (!%p328_p10), 64512   ;;  %vm1123_vm7 = vcmask (!%p328_p10), 1043456   ;;  %vm1808_vm8 = vmmov (!%p328_p10), 0  }
  0x12   : > { %331 = sbr.rel (%p328_p10) target bundleno = 1350 (0x546), region = 48  ;;  %s1964_s23 = sand.u32 (!%p328_p10), 1, %s1789_s28  }
  0x13   : > { %s1274_s13 = scalar_lea.sflag (!%p328_p10), [#allocation3], %s1964_s23 }
  0x19   : > { %s387_s19 = scalar_select %p386_p11, %s1797_s30, 1 }
  0x1b   : > { %s1915_s20 = sshll.u32 %s387_s19, 3  ;;  %s1493_s21 = sshll.u32 %s387_s19, 6 }
  0x1c   : > { %s392_s24 = scalar_lea.vmem %s2055_s0, %s1915_s20  ;;  %s396_s11 = scalar_lea.vmem %s2056_s1, %s1915_s20 }
  0x1d   : > { %s410_s16 = scalar_lea.vmem %s2058_s3, %s1915_s20  ;;  %v414_v0 = vld [vmem:[%s392_s24] sm:$0xff]  ;;  %s1932_s18 = scalar_lea.vmem %s2057_s2, %s1493_s21 }
  0x1e   : > { %v447_v1 = vld [vmem:[%s396_s11] sm:$0xff]  ;;  %415 = vxpose.xlu0.b32.start.end [1/1] (short) (narrow) %v414_v0, 16  ;;  %v1672_v37 = vld [vmem:[%s1932_s18 + $0x8] sm:$0xff]   ;;  %v1673_v38 = vld [vmem:[%s1932_s18 + $0x10] sm:$0xff]   ;;  %s1464_s24 = sshll.u32 %s1964_s23, 3  ;;  %s1497_s20 = sshll.u32 %s1797_s30, 7 }
  0x1f   : > { %v456_v2 = vand.u32 4294901760, %v447_v1  ;;  %v1671_v36 = vld [vmem:[%s1932_s18] sm:$0xff]   ;;  %v1674_v49 = vld [vmem:[%s1932_s18 + $0x18] sm:$0xff]   ;;  %v1676_v56 = vld [vmem:[%s1932_s18 + $0x28] sm:$0xff]   ;;  %s378_s11 = scalar_lea.vmem [#allocation2], %s1464_s24  ;;  %s1974_s9 = scalar_lea.hbm %s2062_s7, %s1497_s20 }
  0x20   : > { %v1675_v54 = vld [vmem:[%s1932_s18 + $0x20] sm:$0xff]   ;;  %v1677_v57 = vld [vmem:[%s1932_s18 + $0x30] sm:$0xff]   ;;  %v1678_v58 = vld [vmem:[%s1932_s18 + $0x38] sm:$0xff]   ;;  %s1294_s12 = sshll.u32 %s378_s11, 4  ;;  %s1809_s19 = smov [#allocation2]   ;;  %s1976_s12 = int_to_ptr.vmem [resolvable:$true] %s1294_s12 }
  0x21   : > { %v543_v3 = vsub.f32 %v447_v1, %v456_v2  ;;  %1535 = vmatprep.subr.mxu1 %v456_v2  ;;  %s1695_s18 = scalar_lea.vmem %s1976_s12, 128  ;;  %s1699_s21 = sshll.u32 %s1809_s19, 4  ;;  %s1700_s21 = int_to_ptr.vmem [resolvable:$false] %s1699_s21 }
  0x22   : > { %1536 = vmatpush3.msra.mxu1 %v456_v2  ;;  %p1696_p12 = scmp.ne.s32.totalorder %s1976_s12, %s1695_s18  ;;  %s1701_s22 = scalar_lea.vmem %s1700_s21, 256 }
  0x23   : > { %v544_v4 = vand.u32 4294901760, %v543_v3  ;;  %1565 = vmatprep.subr.bf16.mxu1 %v1671_v36  ;;  %p1702_p1 = scmp.lt.s32.totalorder %s1976_s12, %s1700_s21  ;;  %p1703_p2 = scmp.lt.s32.totalorder %s1701_s22, %s1695_s18 }
  0x24   : > { %p1697_p13 = pnand %p1696_p12, %p1898_p4 }
  0x25   : > { %v545_v5 = vsub.f32 %v543_v3, %v544_v4  ;;  %p1704_p3 = por %p1703_p2, %p1702_p1 }
  0x26   : > { %p1698_p0 = pneg %p1697_p13 }
  0x27   : > { %v546_v6 = vand.u32 4294901760, %v545_v5  ;;  %v1119_v5 = vld [vmem:[%s2060_s5] sm:$0xf] }
  0x28   : > { %p1705_p5 = pnand %p1704_p3, %p1698_p0 }
  0x29   : > { %1540 = vmatprep.subr.mxu0 %v546_v6 }
  0x2a   : > { %1541 = vmatpush3.msra.mxu0 %v546_v6  ;;  %v1807_v6 = vmov 0.0  }
  0x2b   : > { %1545 = vmatprep.subr.mxu0 %v543_v3 }
  0x9e   : > { %v431_v7 = vpop.trf.xlu0 }
  0x9f   : > { %v450_v8 = vsel %vm448_vm0, %v431_v7, 0  ;;  %v1125_v7 = vsel %vm1123_vm7, %v1119_v5, 0 }
  0xa0   : > { %v521_v9 = vand.u32 4294901760, %v450_v8 }
  0xa2   : > { %v522_v10 = vsub.f32 %v450_v8, %v521_v9  ;;  %1542 = vmatprep.mubr.f32.mxu0 %v521_v9  ;;  %v432_v11 = vpop.trf.xlu0 }
  0xa3   : > { %v453_v12 = vsel %vm448_vm0, %v432_v11, 0 }
  0xa4   : > { %v531_v13 = vand.u32 4294901760, %v453_v12  ;;  %v523_v14 = vand.u32 4294901760, %v522_v10 }
  0xa6   : > { %v532_v15 = vsub.f32 %v453_v12, %v531_v13  ;;  %1543 = vmatmul.mubr.f32.vlgmr.msra.gmra.mrb[0].mxu0 %v531_v13  ;;  %v524_v16 = vsub.f32 %v522_v10, %v523_v14 }
  0xa7   : > { %1546 = vmatpush3.msra.mxu0 %v543_v3  ;;  %1547 = vmatprep.mubr.f32.mxu0 %v522_v10 }
  0xa8   : > { %v533_v17 = vand.u32 4294901760, %v532_v15  ;;  %v525_v18 = vand.u32 4294901760, %v524_v16  ;;  %1550 = vmatprep.subr.mxu0 %v456_v2 }
  0xaa   : > { %1537 = vmatprep.mubr.f32.mxu1 %v525_v18  ;;  %v534_v19 = vsub.f32 %v532_v15, %v533_v17 }
  0xac   : > { %v535_v20 = vand.u32 4294901760, %v534_v19  ;;  %v1670_v19 = vld [vmem:[%s410_s16] sm:$0xff]  }
  0xae   : > { %1538 = vmatmul.mubr.f32.vlgmr.msra.gmra.mrb[0].mxu1 %v535_v20  ;;  %1548 = vmatmul.mubr.f32.vlgmr.msra.gmra.mrb[0].mxu0 %v532_v15  ;;  %v1117_v15 = vld [vmem:[%s2059_s4] sm:$0xf] }
  0xaf   : > { %1551 = vmatpush3.msra.mxu0 %v456_v2  ;;  %1552 = vmatprep.mubr.f32.mxu0 %v523_v14  ;;  %v1177_v18 = vsel %vm1123_vm7, %v1117_v15, 0 }
  0xb0   : > { %1555 = vmatprep.subr.mxu0 %v544_v4  ;;  %1566 = vmatpush3.bf16.msra.mxu1 %v1671_v36 }
  0xb1   : > { %1567 = vmatprep.subr.bf16.mxu1 %v1672_v37 }
  0xb4   : > { %1568 = vmatpush3.bf16.msra.mxu1 %v1672_v37 }
  0xb5   : > { %1569 = vmatprep.subr.bf16.mxu1 %v1673_v38 }
  0xb6   : > { %1553 = vmatmul.mubr.f32.vlgmr.msra.gmra.mrb[0].mxu0 %v533_v17 }
  0xb7   : > { %1556 = vmatpush3.msra.mxu0 %v544_v4  ;;  %1557 = vmatprep.mubr.f32.mxu0 %v521_v9 }
  0xb8   : > { %1560 = vmatprep.subr.mxu0 %v456_v2  ;;  %1570 = vmatpush3.bf16.msra.mxu1 %v1673_v38 }
  0xb9   : > { %1571 = vmatprep.subr.bf16.mxu1 %v1674_v49 }
  0xbc   : > { %1572 = vmatpush3.bf16.msra.mxu1 %v1674_v49 }
  0xbd   : > { %1573 = vmatprep.subr.bf16.mxu1 %v1675_v54 }
  0xbe   : > { %1558 = vmatmul.mubr.f32.vlgmr.msra.gmra.mrb[0].mxu0 %v531_v13 }
  0xbf   : > { %1561 = vmatpush3.msra.mxu0 %v456_v2  ;;  %1562 = vmatprep.mubr.f32.mxu0 %v521_v9 }
  0xc0   : > { %1574 = vmatpush3.bf16.msra.mxu1 %v1675_v54  ;;  %1584 = vmatprep.subr.bf16.mxu0 %v1807_v6 }
  0xc1   : > { %1575 = vmatprep.subr.bf16.mxu1 %v1676_v56 }
  0xc4   : > { %1576 = vmatpush3.bf16.msra.mxu1 %v1676_v56 }
  0xc5   : > { %1577 = vmatprep.subr.bf16.mxu1 %v1677_v57 }
  0xc6   : > { %1563 = vmatmul.mubr.f32.vlgmr.msra.gmra.mrb[0].mxu0 %v531_v13 }
  0xc7   : > { %1585 = vmatpush3.bf16.msra.mxu0 %v1125_v7  ;;  %1586 = vmatprep.mubr.msk.bf16.mxu0 %vm1808_vm8, %v1807_v6 }
  0xc8   : > { %1578 = vmatpush3.bf16.msra.mxu1 %v1677_v57  ;;  %1590 = vmatprep.subr.bf16.mxu0 %v1807_v6 }
  0xc9   : > { %1579 = vmatprep.subr.bf16.mxu1 %v1678_v58 }
  0xcc   : > { %1580 = vmatpush3.bf16.msra.mxu1 %v1678_v58 }
 0x181   : > { %v1539_v21 = vpop.f32.mrb[0].mxu1 }
 0x182   : > { %v527_v22 = vpop.f32.mrb[1].mxu1 }
 0x199   : > { %v1564_v23 = vpop.f32.mrb[0].mxu0 }
 0x19a   : > { %v1596_v24 = vadd.f32 %v1564_v23, %v1539_v21  ;;  %v934_v25 = vpop.f32.mrb[1].mxu0 }
 0x19b   : > { %v1597_v26 = vadd.f32 %v934_v25, %v527_v22  ;;  %v1483_v25 = vld [vmem:[%s2061_s6] ss:$0 sm:$0xff] }
 0x19c   : > { %v945_v27 = vmax.f32 %v1596_v24, 0.0 }
 0x19d   : > { %v944_v28 = vmax.f32 %v1597_v26, 0.0 }
 0x19e   : > { %948 = vmin.xlane.f32.xlu1 %v945_v27 }
 0x19f   : > { %946 = vmin.xlane.f32.xlu0 %v944_v28 }
 0x22b   : > { %v949_v29 = vpop.xlane.xlu1 %948 }
 0x22c   : > { %v947_v30 = vpop.xlane.xlu0 %946  ;;  %vm951_vm2 = vcmp.le.f32.partialorder %v945_v27, %v949_v29  ;;  %v953_v40 = vadd.f32 1e-08, %v949_v29 }
 0x22d   : > { %vm950_vm1 = vcmp.le.f32.partialorder %v944_v28, %v947_v30  ;;  %v952_v31 = vadd.f32 1e-08, %v947_v30  ;;  %v963_v33 = vsel %vm951_vm2, 1e+30, %v945_v27 }
 0x22e   : > { %v962_v32 = vsel %vm950_vm1, 1e+30, %v944_v28 }
 0x22f   : > { %1679 = vrcp.f32 %v952_v31  ;;  %964 = vmin.xlane.f32.xlu1 %v962_v32 }
 0x233   : > { %966 = vmin.xlane.f32.xlu1 %v963_v33 }
 0x239   : > { %v1680_v34 = vpop.eup %1679 }
 0x23a   : > { %v958_v35 = vsel %vm950_vm1, %v1680_v34, 0.0 }
 0x2bc   : > { %v965_v39 = vpop.xlane.xlu1 %964 }
 0x2bd   : > { %v970_v41 = vadd.f32 1e-08, %v965_v39  ;;  %vm968_vm3 = vcmp.le.f32.partialorder %v962_v32, %v965_v39 }
 0x2be   : > { %v980_v42 = vsel %vm968_vm3, 1e+30, %v962_v32 }
 0x2bf   : > { %1681 = vrcp.f32 %v970_v41  ;;  %982 = vmin.xlane.f32.xlu1 %v980_v42 }
 0x2c0   : > { %v967_v43 = vpop.xlane.xlu1 %966  ;;  %1683 = vrcp.f32 %v953_v40 }
 0x2c1   : > { %v971_v44 = vadd.f32 1e-08, %v967_v43  ;;  %vm969_vm4 = vcmp.le.f32.partialorder %v963_v33, %v967_v43 }
 0x2c2   : > { %v981_v45 = vsel %vm969_vm4, 1e+30, %v963_v33 }
 0x2c3   : > { %1685 = vrcp.f32 %v971_v44  ;;  %984 = vmin.xlane.f32.xlu1 %v981_v45 }
 0x2c9   : > { %v1682_v46 = vpop.eup %1681 }
 0x2ca   : > { %v976_v47 = vsel %vm968_vm3, %v1682_v46, 0.0  ;;  %v1684_v48 = vpop.eup %1683 }
 0x2cb   : > { %v978_v50 = vadd.f32 %v976_v47, %v958_v35  ;;  %v959_v52 = vsel %vm951_vm2, %v1684_v48, 0.0 }
 0x2cd   : > { %v1686_v51 = vpop.eup %1685 }
 0x2ce   : > { %v977_v53 = vsel %vm969_vm4, %v1686_v51, 0.0 }
 0x2cf   : > { %v979_v55 = vadd.f32 %v977_v53, %v959_v52 }
 0x34c   : > { %v983_v59 = vpop.xlane.xlu1 %982 }
 0x34d   : > { %v988_v60 = vadd.f32 1e-08, %v983_v59  ;;  %vm986_vm5 = vcmp.le.f32.partialorder %v980_v42, %v983_v59 }
 0x34f   : > { %1687 = vrcp.f32 %v988_v60 }
 0x350   : > { %v985_v61 = vpop.xlane.xlu1 %984 }
 0x351   : > { %v989_v62 = vadd.f32 1e-08, %v985_v61  ;;  %vm987_vm6 = vcmp.le.f32.partialorder %v981_v45, %v985_v61 }
 0x353   : > { %1689 = vrcp.f32 %v989_v62 }
 0x359   : > { %v1688_v63 = vpop.eup %1687 }
 0x35a   : > { %v994_v0 = vsel %vm986_vm5, %v1688_v63, 0.0 }
 0x35b   : > { %v996_v1 = vadd.f32 %v994_v0, %v978_v50 }
 0x35d   : > { %v1690_v2 = vpop.eup %1689  ;;  %998 = vadd.xlane.f32.xlu1 %v996_v1  ;;  %1581 = vmatprep.mubr.f32.mxu1 %v996_v1 }
 0x35e   : > { %v995_v3 = vsel %vm987_vm6, %v1690_v2, 0.0 }
 0x35f   : > { %v997_v4 = vadd.f32 %v995_v3, %v979_v55 }
 0x361   : > { %1000 = vadd.xlane.f32.xlu1 %v997_v4  ;;  %1582 = vmatmul.mubr.f32.vlgmr.msra.gmra.mrb[2].mxu1 %v997_v4 }
 0x3ea   : > { %v999_v8 = vpop.xlane.xlu1 %998 }
 0x3ee   : > { %v1001_v9 = vpop.xlane.xlu1 %1000 }
 0x3ef   : > { %1691 = vrcp.f32 %v1001_v9 }
 0x3f0   : > { %1693 = vrcp.f32 %v999_v8 }
 0x3f9   : > { %v1692_v10 = vpop.eup %1691 }
 0x3fa   : > { %v1694_v12 = vpop.eup %1693 }
 0x434   : > { %v1583_v11 = vpop.f32.mrb[2].mxu1 }
 0x435   : > { %v1114_v13 = vmul.f32 %v1692_v10, %v1583_v11  ;;  %v1104_v14 = vpop.f32.mrb[3].mxu1 }
 0x436   : > { %v1113_v16 = vmul.f32 %v1694_v12, %v1104_v14 }
 0x438   : > { %v1118_v17 = vpack.c.bf16 %v1114_v13, %v1113_v16 }
 0x43a   : > { %1587 = vmatmul.mubr.msk.bf16.vlgmr.msra.gmra.mrb[4].mxu0 %vm448_vm0, %v1118_v17 }
 0x43b   : > { %1591 = vmatpush3.bf16.msra.mxu0 %v1177_v18  ;;  %1592 = vmatprep.mubr.msk.bf16.mxu0 %vm1808_vm8, %v1807_v6 }
 0x442   : > { %1593 = vmatmul.mubr.msk.bf16.vlgmr.msra.gmra.mrb[8].mxu0 %vm448_vm0, %v1670_v19 }
 0x50d   : > { %v1161_v20 = vpop.f32.mrb[4].mxu0 }
 0x50e   : > { %v1588_v21 = vpop.f32.mrb[5].mxu0 }
 0x50f   : > { %v1164_v22 = vpop.f32.mrb[6].mxu0 }
 0x510   : > { %v1589_v23 = vpop.f32.mrb[7].mxu0 }
 0x515   : > { %v1213_v24 = vpop.f32.mrb[8].mxu0 }
 0x516   : > { %v1214_v26 = vadd.f32 %v1213_v24, %v1161_v20  ;;  %v1594_v27 = vpop.f32.mrb[9].mxu0 }
 0x517   : > { %v1216_v28 = vpop.f32.mrb[10].mxu0 }
 0x518   : > { %v1227_v29 = vadd.f32 %v1483_v25, %v1214_v26  ;;  %v1217_v30 = vadd.f32 %v1216_v28, %v1164_v22  ;;  %v1595_v31 = vpop.f32.mrb[11].mxu0 }
 0x51a   : > { %v1228_v32 = vadd.f32 %v1483_v25, %v1217_v30  ;;  %v1261_v33 = vmul.f32 %v1227_v29, %v1227_v29 }
 0x51c   : > { %v1501_v34 = vpack.c.bf16 %v1228_v32, %v1227_v29  ;;  %v1254_v35 = vadd.f32 %v1228_v32, %v1227_v29  ;;  %v1262_v36 = vmul.f32 %v1228_v32, %v1228_v32 }
 0x51e   : > { %v1255_v37 = vrot.slane %v1254_v35, 4  ;;  %v1263_v38 = vadd.f32 %v1262_v36, %v1261_v33  ;;  %1502 = vst [vmem:[%s378_s11] sm:$0xff] %v1501_v34  }
 0x51f   : > { %1708 = shalt.err (!%p1705_p5)
}
 0x520   : > { %s1709_s24 = scalar_lea.hbm %s1974_s9, 128  ;;  %s1713_s20 = scalar_lea.hbm %s2062_s7, 256 }
 0x521   : > { %p1710_p6 = scmp.ne.s32.totalorder %s1974_s9, %s1709_s24  ;;  %p1714_p10 = scmp.lt.u32.totalorder %s1974_s9, %s2062_s7 }
 0x522   : > { %p1715_p11 = scmp.lt.u32.totalorder %s1713_s20, %s1709_s24  ;;  %p1717_p13 = scmp.lt.u32.totalorder %s1709_s24, %s1974_s9 }
 0x523   : > { %p1711_p7 = pnand %p1710_p6, %p1898_p4 }
 0x524   : > { %p1716_p12 = por %p1715_p11, %p1714_p10 }
 0x525   : > { %p1712_p9 = pneg %p1711_p7 }
 0x526   : > { %p1718_p0 = por %p1717_p13, %p1716_p12 }
 0x528   : > { %p1719_p1 = pnand %p1718_p0, %p1712_p9 }
 0x52a   : > { %1722 = shalt.err (!%p1719_p1)
}
 0x52b   : > { %s1810_s16 = smov 64   ;;  %s1811_s18 = smov 4   ;;  %v1256_v39 = vadd.f32 %v1255_v37, %v1254_v35  ;;  %v1264_v40 = vrot.slane %v1263_v38, 4  ;;  %vm1270_vm9 = vcmask 1040384  }
 0x52c   : > { %1606 = dma.vmem_to_hbm [thread:$0]  (%p1898_p4), %s1976_s12, 128, %s1974_s9, %s1274_s13, %s1810_s16, %s1810_s16, %s1811_s18  }
 0x52d   : > { %v1257_v41 = vrot.slane %v1256_v39, 2  ;;  %v1265_v42 = vadd.f32 %v1264_v40, %v1263_v38  ;;  %s1465_s19 = sshll.u32 %s1964_s23, 1  ;;  %s1490_s21 = sshll.u32 %s1797_s30, 5 }
 0x52e   : > { %s385_s22 = scalar_lea.vmem [#allocation4], %s1465_s19  ;;  %s2007_s9 = scalar_lea.hbm %s2063_s8, %s1490_s21 }
 0x52f   : > { %v1258_v43 = vadd.f32 %v1257_v41, %v1256_v39  ;;  %v1266_v44 = vrot.slane %v1265_v42, 2  ;;  %s1311_s24 = sshll.u32 %s385_s22, 4  ;;  %s1279_s13 = scalar_lea.sflag [#allocation5], %s1964_s23  ;;  %s2009_s24 = int_to_ptr.vmem [resolvable:$true] %s1311_s24 }
 0x530   : > { %s1723_s26 = scalar_lea.vmem %s2009_s24, 32  ;;  %s1812_s30 = smov [#allocation4]  }
 0x531   : > { %v1259_v45 = vrot.slane %v1258_v43, 1  ;;  %v1267_v46 = vadd.f32 %v1266_v44, %v1265_v42  ;;  %p1724_p2 = scmp.ne.s32.totalorder %s2009_s24, %s1723_s26  ;;  %s1727_s20 = sshll.u32 %s1812_s30, 4  ;;  %s1728_s20 = int_to_ptr.vmem [resolvable:$false] %s1727_s20 }
 0x532   : > { %s1729_s11 = scalar_lea.vmem %s1728_s20, 64  ;;  %p1730_p6 = scmp.lt.s32.totalorder %s2009_s24, %s1728_s20 }
 0x533   : > { %v1268_v47 = vrot.slane %v1267_v46, 1  ;;  %v1260_v48 = vadd.f32 %v1259_v45, %v1258_v43  ;;  %p1725_p3 = pnand %p1724_p2, %p1898_p4  ;;  %p1731_p7 = scmp.lt.s32.totalorder %s1729_s11, %s1723_s26 }
 0x535   : > { %v1269_v49 = vadd.f32 %v1268_v47, %v1267_v46  ;;  %p1726_p5 = pneg %p1725_p3  ;;  %p1732_p9 = por %p1731_p7, %p1730_p6 }
 0x537   : > { %v1271_v50 = vsel %vm1270_vm9, %v1260_v48, %v1269_v49  ;;  %p1733_p10 = pnand %p1732_p9, %p1726_p5 }
 0x538   : > { %1272 = vst [vmem:[%s385_s22] sm:$0x3] %v1271_v50 }
 0x539   : > { %1736 = shalt.err (!%p1733_p10)
}
 0x53a   : > { %s1737_s23 = scalar_lea.hbm %s2007_s9, 32  ;;  %s1741_s18 = scalar_lea.hbm %s2063_s8, 64 }
 0x53b   : > { %p1738_p11 = scmp.ne.s32.totalorder %s2007_s9, %s1737_s23  ;;  %p1742_p0 = scmp.lt.u32.totalorder %s2007_s9, %s2063_s8 }
 0x53c   : > { %p1743_p1 = scmp.lt.u32.totalorder %s1741_s18, %s1737_s23  ;;  %p1745_p3 = scmp.lt.u32.totalorder %s1737_s23, %s2007_s9 }
 0x53d   : > { %p1739_p12 = pnand %p1738_p11, %p1898_p4 }
 0x53e   : > { %p1744_p2 = por %p1743_p1, %p1742_p0 }
 0x53f   : > { %p1740_p13 = pneg %p1739_p12 }
 0x540   : > { %p1746_p5 = por %p1745_p3, %p1744_p2 }
 0x542   : > { %p1747_p6 = pnand %p1746_p5, %p1740_p13 }
 0x544   : > { %1750 = shalt.err (!%p1747_p6)
}
 0x545   : > { %1607 = dma.vmem_to_hbm [thread:$0]  (%p1898_p4), %s2009_s24, 32, %s2007_s9, %s1279_s13  }
 0x546 PF: > { %p1617_p7 = scmp.ge.s32.totalorder %s1805_s10, 2  ;;  %s1323_s22 = sand.u32 1, %s1785_s27  }
 0x547   : > { %s1324_s25 = scalar_lea.sflag [#allocation3], %s1323_s22 }
 0x548   : > { %p1611_p9 = pnand %p1617_p7, %p1905_p8 }
 0x54a   : > { %1776 = dma.done.wait (!%p1611_p9), %s1324_s25, 128  }
 0x54b   : > { %1778 = vsyncadd (!%p1611_p9), %s1324_s25, 4294967168  ;;  %s1333_s12 = scalar_lea.sflag [#allocation5], %s1323_s22 }
 0x54c   : > { %1780 = dma.done.wait (!%p1611_p9), %s1333_s12, 32  }
 0x54d   : > { %1782 = vsyncadd (!%p1611_p9), %s1333_s12, 4294967264  ;;  %s25_s10 = sadd.s32 1, %s1805_s10   ;;  %s2071_s15 = sld [smem:[#allocation10_spill]] }
 0x54e   : > { %p22_p10 = scmp.ge.s32.totalorder %s25_s10, 4   ;;  %s2072_s30 = sld [smem:[#allocation8_spill]] }
 0x54f   : > { %s2073_s9 = sld [smem:[#allocation9_spill]]  ;;  %s2074_s27 = smov %s1789_s28 }
 0x550   : > { %s2075_s28 = smov %s1793_s29  ;;  %24 = sbr.rel (!%p22_p10) target bundleno = 6 (0x6), region = 109 }
 0x553   : > { %s2076_s29 = smov %s2071_s15 }
 0x557   :  { %1338 = vsyncpa [#allocation3], 1 }
 0x558   :  { %1340 = vsyncpa [#allocation3 + $0x1], 1 }
 0x559   :  { %1341 = vsyncpa [#allocation5], 1 }
 0x55a   :  { %1343 = vsyncpa [#allocation5 + $0x1], 1 }

</bundles_post_ra>
